<compile_context>
chip_gen: v6e
topology: v6e:2x2x1
jax: 0.10.0
libtpu: 0.0.40
codegen_flags: <defaults>
</compile_context>

<pallas_src>
import functools

import jax
import jax.numpy as jnp
from jax.experimental import pallas as pl
from jax.experimental.pallas import tpu as pltpu


def _make_max_kernel(no_g, hw):
    def kernel(x_ref, o_ref):
        # x_ref: (TR, no_g*hw), o_ref: (TR, hw)
        acc = x_ref[:, 0:hw]
        for g in range(1, no_g):
            acc = jnp.maximum(acc, x_ref[:, g * hw:(g + 1) * hw])
        o_ref[...] = acc

    return kernel


def _make_avg_kernel(no_g, hw):
    inv = 1.0 / float(no_g)

    def kernel(x_ref, o_ref):
        # Accumulate in f32, scale by 1/no_g (compile-time const), cast at store.
        acc = x_ref[:, 0:hw].astype(jnp.float32)
        for g in range(1, no_g):
            acc = acc + x_ref[:, g * hw:(g + 1) * hw].astype(jnp.float32)
        o_ref[...] = (acc * inv).astype(o_ref.dtype)

    return kernel


def _pick_row_tile(rows, no_g, hw, itemsize):
    """Pick TR rows per grid step.

    TR must be a multiple of 8 that divides `rows` (so there is no ragged
    tail block), or equal to `rows` (full-axis block is always legal).
    Target ~2 MiB of input per step: small enough for default scoped VMEM on
    all generations (incl. v7x's 64 MiB physical / 32 MiB scoped with double
    buffering), large enough to amortize per-step pipeline overhead.
    """
    if rows % 8 != 0:
        return rows  # full row axis as a single block (legal tiling)

    target_bytes = 2 * 1024 * 1024
    bytes_per_row = (no_g * hw + hw) * itemsize
    target_tr = max(8, (target_bytes // max(bytes_per_row, 1)) // 8 * 8)

    # Keep at least 2 grid steps when there is enough work (feeds both v7x TCs).
    if rows >= 16:
        half = max(8, (rows // 2) // 8 * 8)
        target_tr = min(target_tr, half)

    tr = min(target_tr, rows)
    tr = max(8, (tr // 8) * 8)
    while tr > 8 and rows % tr != 0:
        tr -= 8
    if rows % tr != 0:
        tr = rows
    return tr


@functools.partial(jax.jit, static_argnames=("no_g", "pool_type"))
def gabor_pool(x, no_g, pool_type="max"):
    """Pallas implementation of GaborPool.forward.

    x: (B, C, H, W) with C % no_g == 0  ->  (B, C // no_g, H, W)
    """
    b, c, h, w = x.shape
    assert c % no_g == 0, "channels must be divisible by no_g"
    c_out = c // no_g
    hw = h * w
    rows = b * c_out

    # Glue (pure metadata): (B, C, H, W) -> (B*C_out, no_g*H*W).
    # Consecutive no_g channels form one group, matching the PyTorch
    # view(b, c // no_g, no_g, w, h) grouping.
    x2 = x.reshape(rows, no_g * hw)

    tr = _pick_row_tile(rows, no_g, hw, x.dtype.itemsize)
    grid = (rows // tr,)

    if pool_type == "avg":
        kernel = _make_avg_kernel(no_g, hw)
    else:  # 'max' and anything else falls back to max, like the module
        kernel = _make_max_kernel(no_g, hw)

    out2 = pl.pallas_call(
        kernel,
        out_shape=jax.ShapeDtypeStruct((rows, hw), x.dtype),
        grid_spec=pl.GridSpec(
            grid=grid,
            in_specs=[pl.BlockSpec((tr, no_g * hw), lambda i: (i, 0))],
            out_specs=pl.BlockSpec((tr, hw), lambda i: (i, 0)),
        ),
        compiler_params=pltpu.CompilerParams(
            dimension_semantics=("parallel",)
        ),
    )(x2)

    return out2.reshape(b, c_out, h, w)


if __name__ == "__main__":
    # Small deterministic example consistent with the module:
    # batch=2, channels=16, no_g=4 (so C_out=4), spatial 16x16.
    no_g = 4
    B, C, H, W = 2, 16, 16, 16

    key = jax.random.PRNGKey(0)
    x = jax.random.normal(key, (B, C, H, W), dtype=jnp.float32)

    # Max pooling path.
    out_max = gabor_pool(x, no_g=no_g, pool_type="max")
    out_max = jax.block_until_ready(out_max)
    ref_max = jnp.max(x.reshape(B, C // no_g, no_g, H, W), axis=2)
    assert out_max.shape == (B, C // no_g, H, W)
    assert jnp.allclose(out_max, ref_max), "Pallas max result mismatch vs reference"

    # Avg pooling path.
    out_avg = gabor_pool(x, no_g=no_g, pool_type="avg")
    out_avg = jax.block_until_ready(out_avg)
    ref_avg = jnp.mean(x.reshape(B, C // no_g, no_g, H, W), axis=2)
    assert out_avg.shape == (B, C // no_g, H, W)
    assert jnp.allclose(out_avg, ref_avg, atol=1e-6), "Pallas avg result mismatch vs reference"

    print("KERNEL_OK")
</pallas_src>

<mosaic_0001>
module attributes {stable_mosaic.version = 11 : i64} {
  func.func @kernel(%arg0: i32, %arg1: memref<8x1024xf32, #tpu.memory_space<vmem>>, %arg2: memref<8x256xf32, #tpu.memory_space<vmem>>) attributes {dimension_semantics = [#tpu.dimension_semantics<parallel>], iteration_bounds = array<i64: 1>, scalar_prefetch = 0 : i64, scratch_operands = 0 : i64, tpu.core_type = #tpu.core_type<tc>, window_params = [{transform_indices = @transform_0, window_bounds = array<i64: 8, 1024>}, {transform_indices = @transform_1, window_bounds = array<i64: 8, 256>}]} {
    %c0 = arith.constant 0 : index
    %c0_0 = arith.constant 0 : index
    %0 = vector.load %arg1[%c0, %c0_0] : memref<8x1024xf32, #tpu.memory_space<vmem>>, vector<8x256xf32>
    %c0_1 = arith.constant 0 : index
    %c256 = arith.constant 256 : index
    %1 = vector.load %arg1[%c0_1, %c256] : memref<8x1024xf32, #tpu.memory_space<vmem>>, vector<8x256xf32>
    %2 = arith.maximumf %0, %1 : vector<8x256xf32>
    %c0_2 = arith.constant 0 : index
    %c512 = arith.constant 512 : index
    %3 = vector.load %arg1[%c0_2, %c512] : memref<8x1024xf32, #tpu.memory_space<vmem>>, vector<8x256xf32>
    %4 = arith.maximumf %2, %3 : vector<8x256xf32>
    %c0_3 = arith.constant 0 : index
    %c768 = arith.constant 768 : index
    %5 = vector.load %arg1[%c0_3, %c768] : memref<8x1024xf32, #tpu.memory_space<vmem>>, vector<8x256xf32>
    %6 = arith.maximumf %4, %5 : vector<8x256xf32>
    %c0_4 = arith.constant 0 : index
    %c0_5 = arith.constant 0 : index
    %7 = vector.load %arg2[%c0_4, %c0_5] : memref<8x256xf32, #tpu.memory_space<vmem>>, vector<8x256xf32>
    tpu.vector_store %arg2[%c0_4, %c0_5], %6 {strides = array<i32>} : memref<8x256xf32, #tpu.memory_space<vmem>>, vector<8x256xf32>,
    return
  }
  func.func @transform_0(%arg0: i32) -> (i32, i32) {
    %c0_i32 = arith.constant 0 : i32
    %c0_i32_0 = arith.constant 0 : i32
    return %arg0, %c0_i32 : i32, i32
  }
  func.func @transform_1(%arg0: i32) -> (i32, i32) {
    %c0_i32 = arith.constant 0 : i32
    %c0_i32_0 = arith.constant 0 : i32
    return %arg0, %c0_i32 : i32, i32
  }
}

</mosaic_0001>

<bundles_post_ra>
// kernel: gabor_pool.1
= control target key start
LH: loop header
LB: loop body
LE: loop exit
PB: predicated region body
PF: predicated region fallthrough
CT: control target
= control target key end

     0   :  { %s68_s0 = inlined_call_operand.vmem [shape: f32[8,1024], index: 0, kind: input, shape index: {}]   ;;  %s69_s1 = inlined_call_operand.vmem [shape: f32[8,256], index: 1, kind: output, shape index: {}]  }
   0x1   :  { %v8_v0 = vld [vmem:[%s68_s0] sm:$0xff]  ;;  %v10_v1 = vld [vmem:[%s68_s0 + $0x10] sm:$0xff]  ;;  %v9_v4 = vld [vmem:[%s68_s0 + $0x8] sm:$0xff] }
   0x2   :  { %v14_v2 = vld [vmem:[%s68_s0 + $0x20] sm:$0xff]  ;;  %v12_v3 = vmax.f32 %v8_v0, %v10_v1  ;;  %v11_v5 = vld [vmem:[%s68_s0 + $0x18] sm:$0xff]  ;;  %v18_v6 = vld [vmem:[%s68_s0 + $0x30] sm:$0xff] }
   0x3   :  { %v13_v7 = vmax.f32 %v9_v4, %v11_v5  ;;  %v15_v8 = vld [vmem:[%s68_s0 + $0x28] sm:$0xff]  ;;  %v19_v10 = vld [vmem:[%s68_s0 + $0x38] sm:$0xff] }
   0x4   :  { %v16_v9 = vmax.f32 %v12_v3, %v14_v2 }
   0x5   :  { %v17_v11 = vmax.f32 %v13_v7, %v15_v8 }
   0x6   :  { %v20_v12 = vmax.f32 %v16_v9, %v18_v6 }
   0x7   :  { %v21_v13 = vmax.f32 %v17_v11, %v19_v10 }
   0x8   :  { %22 = vst [vmem:[%s69_s1] sm:$0xff] %v20_v12 }
   0x9   :  { %23 = vst [vmem:[%s69_s1 + $0x8] sm:$0xff] %v21_v13 }

</bundles_post_ra>
